<compile_context>
chip_gen: v6e
topology: v6e:2x2x1
jax: 0.10.0
libtpu: 0.0.40
codegen_flags: <defaults>
</compile_context>

<pallas_src>
import functools

import jax
import jax.numpy as jnp
from jax.experimental import pallas as pl
from jax.experimental.pallas import tpu as pltpu


_ISSUE_UNROLL = 8  # unroll factor for the DMA-descriptor issue loop


def _issue_row_dmas(ids_ref, w_hbm, out_hbm, sem, base, n):
    """Issue `n` row-gather DMAs: weight[ids[base+r]] -> out[base+r], r in [0, n)."""
    n_main = (n // _ISSUE_UNROLL) * _ISSUE_UNROLL
    if n_main > 0:
        @pl.loop(0, n_main, step=_ISSUE_UNROLL)
        def _issue(r0):
            r0 = pl.multiple_of(r0, _ISSUE_UNROLL)
            for u in range(_ISSUE_UNROLL):
                row = base + r0 + u
                tok = ids_ref[row]
                pltpu.make_async_copy(w_hbm.at[tok], out_hbm.at[row], sem).start()
    # Static remainder (< _ISSUE_UNROLL rows), fully unrolled at trace time.
    for r in range(n_main, n):
        row = base + r
        tok = ids_ref[row]
        pltpu.make_async_copy(w_hbm.at[tok], out_hbm.at[row], sem).start()


def _embedding_gather_kernel(ids_ref, w_hbm, out_hbm, sem, *, tile_rows, rows):
    """One grid step gathers up to `tile_rows` embedding rows directly HBM -> HBM."""
    base = pl.multiple_of(pl.program_id(0) * tile_rows, tile_rows)
    tail = rows % tile_rows  # static Python int

    def gather_tile(n):
        _issue_row_dmas(ids_ref, w_hbm, out_hbm, sem, base, n)
        # Single aggregate drain for the whole tile.  DMA semaphores account
        # bytes; each row DMA above moved exactly H*itemsize bytes, so one
        # wait on an (n, H)-shaped descriptor decrements by n*H*itemsize and
        # drains all n row copies at once.
        pltpu.make_async_copy(
            w_hbm.at[pl.ds(0, n)], out_hbm.at[pl.ds(base, n)], sem
        ).wait()

    if tail == 0:
        # All tiles are full: one code path, no per-row masking.
        gather_tile(tile_rows)
    else:
        last = pl.num_programs(0) - 1

        @pl.when(pl.program_id(0) != last)
        def _full_tile():
            gather_tile(tile_rows)

        @pl.when(pl.program_id(0) == last)
        def _tail_tile():
            gather_tile(tail)


def embedding_lookup_pallas(input_ids, weight, *, tile_rows=None):
    """input_ids: [B, S] int; weight: [V, H]. Returns [B, S, H] in weight.dtype."""
    B, S = input_ids.shape
    V, H = weight.shape
    rows = B * S

    ids_flat = input_ids.reshape(rows).astype(jnp.int32)

    if tile_rows is None:
        # Large tiles amortize the per-grid-step overhead and the end-of-tile
        # drain bubble; the kernel allocates zero VMEM so tile size is not
        # VMEM-limited.  Clamp to cdiv(rows, 2) so there are always >= 2 grid
        # steps and megacore ("parallel" axis) can split issue work on v7x.
        tile_rows = min(512, max(1, pl.cdiv(rows, 2)))
    tile_rows = max(1, min(int(tile_rows), rows))

    num_tiles = pl.cdiv(rows, tile_rows)
    bytes_per_row = H * weight.dtype.itemsize
    cost = pl.CostEstimate(
        flops=0,
        transcendentals=0,
        bytes_accessed=2 * rows * bytes_per_row + rows * 4,
    )

    out_flat = pl.pallas_call(
        functools.partial(_embedding_gather_kernel, tile_rows=tile_rows, rows=rows),
        out_shape=jax.ShapeDtypeStruct((rows, H), weight.dtype),
        grid_spec=pltpu.PrefetchScalarGridSpec(
            num_scalar_prefetch=1,                          # ids -> SMEM
            grid=(num_tiles,),
            in_specs=[pl.BlockSpec(memory_space=pl.ANY)],   # weight stays in HBM
            out_specs=pl.BlockSpec(memory_space=pl.ANY),    # gather writes HBM directly
            scratch_shapes=[pltpu.SemaphoreType.DMA(())],
        ),
        compiler_params=pltpu.CompilerParams(
            dimension_semantics=("parallel",),              # megacore sharding on v7x
        ),
        cost_estimate=cost,
    )(ids_flat, weight)

    # (rows, H) -> (B, S, H): contiguous row-major reshape, metadata-only.
    return out_flat.reshape(B, S, H)


def embedding_pipe_layer_forward(ipt, embed_weight):
    """Mirrors EmbeddingPipeLayer.forward."""
    input_ids, attention_mask, position_ids = ipt
    inputs_embeds = embedding_lookup_pallas(input_ids, embed_weight)
    return (inputs_embeds, attention_mask, position_ids)


if __name__ == "__main__":
    key = jax.random.PRNGKey(0)
    B, S, H, V = 2, 8, 128, 64

    k1, k2 = jax.random.split(key)
    embed_weight = jax.random.normal(k1, (V, H), dtype=jnp.float32)
    input_ids = jax.random.randint(k2, (B, S), 0, V, dtype=jnp.int32)
    attention_mask = jnp.ones((B, S), dtype=jnp.int32)
    position_ids = jnp.broadcast_to(jnp.arange(S, dtype=jnp.int32)[None, :], (B, S))

    ref = embed_weight[input_ids]  # jnp gather reference

    # Default tiling: rows=16 -> tile_rows=8, 2 tiles (exercises megacore split).
    out, am, pid = embedding_pipe_layer_forward(
        (input_ids, attention_mask, position_ids), embed_weight
    )
    out = jax.block_until_ready(out)
    assert out.shape == (B, S, H) and out.dtype == embed_weight.dtype
    assert jnp.array_equal(out, ref), "mismatch vs reference embedding lookup"
    assert am is attention_mask and pid is position_ids

    # Ragged-tail path: 16 rows, tile_rows=5 -> 4 tiles with a tail of 1.
    out2 = jax.block_until_ready(
        embedding_lookup_pallas(input_ids, embed_weight, tile_rows=5)
    )
    assert jnp.array_equal(out2, ref), "mismatch vs reference (ragged-tail path)"

    # Single-tile path: tile_rows == rows.
    out3 = jax.block_until_ready(
        embedding_lookup_pallas(input_ids, embed_weight, tile_rows=16)
    )
    assert jnp.array_equal(out3, ref), "mismatch vs reference (single-tile path)"

    print("KERNEL_OK")
</pallas_src>

<mosaic_0001>
module attributes {stable_mosaic.version = 11 : i64} {
  func.func @_embedding_gather_kernel(%arg0: i32, %arg1: memref<16xi32, #tpu.memory_space<smem>>, %arg2: memref<64x128xf32, #tpu.memory_space<any>>, %arg3: memref<16x128xf32, #tpu.memory_space<any>>, %arg4: memref<!tpu.dma_semaphore, #tpu.memory_space<semaphore_mem>>) attributes {dimension_semantics = [#tpu.dimension_semantics<parallel>], iteration_bounds = array<i64: 2>, scalar_prefetch = 1 : i64, scratch_operands = 1 : i64, tpu.core_type = #tpu.core_type<tc>, window_params = [{}, {}]} {
    %c8_i32 = arith.constant 8 : i32
    %0 = arith.muli %arg0, %c8_i32 : i32
    %1 = tpu.assume_multiple %0, 8 : i32
    %c0_i32 = arith.constant 0 : i32
    %c8_i32_0 = arith.constant 8 : i32
    %2 = arith.muli %c0_i32, %c8_i32_0 : i32
    %c0_i32_1 = arith.constant 0 : i32
    %3 = arith.addi %c0_i32_1, %2 : i32
    %4 = tpu.assume_multiple %3, 8 : i32
    %5 = arith.addi %1, %4 : i32
    %c0_i32_2 = arith.constant 0 : i32
    %6 = arith.addi %5, %c0_i32_2 : i32
    %7 = arith.index_cast %6 : i32 to index
    %8 = memref.load %arg1[%7] : memref<16xi32, #tpu.memory_space<smem>>
    %c0_i32_3 = arith.constant 0 : i32
    %9 = tpu.memref_slice %arg2[%8, %c0_i32_3] : memref<64x128xf32, #tpu.memory_space<any>> -> memref<1x128xf32, #tpu.memory_space<any>>
    %10 = tpu.memref_squeeze %9 : memref<1x128xf32, #tpu.memory_space<any>> -> memref<128xf32, #tpu.memory_space<any>>
    %c0_i32_4 = arith.constant 0 : i32
    %11 = tpu.memref_slice %arg3[%6, %c0_i32_4] : memref<16x128xf32, #tpu.memory_space<any>> -> memref<1x128xf32, #tpu.memory_space<any>>
    %12 = tpu.memref_squeeze %11 : memref<1x128xf32, #tpu.memory_space<any>> -> memref<128xf32, #tpu.memory_space<any>>
    tpu.enqueue_dma source(%10 : memref<128xf32, #tpu.memory_space<any>>) target(%12 : memref<128xf32, #tpu.memory_space<any>>) target_semaphore(%arg4 : memref<!tpu.dma_semaphore, #tpu.memory_space<semaphore_mem>>)
    %13 = arith.addi %1, %4 : i32
    %c1_i32 = arith.constant 1 : i32
    %14 = arith.addi %13, %c1_i32 : i32
    %15 = arith.index_cast %14 : i32 to index
    %16 = memref.load %arg1[%15] : memref<16xi32, #tpu.memory_space<smem>>
    %c0_i32_5 = arith.constant 0 : i32
    %17 = tpu.memref_slice %arg2[%16, %c0_i32_5] : memref<64x128xf32, #tpu.memory_space<any>> -> memref<1x128xf32, #tpu.memory_space<any>>
    %18 = tpu.memref_squeeze %17 : memref<1x128xf32, #tpu.memory_space<any>> -> memref<128xf32, #tpu.memory_space<any>>
    %c0_i32_6 = arith.constant 0 : i32
    %19 = tpu.memref_slice %arg3[%14, %c0_i32_6] : memref<16x128xf32, #tpu.memory_space<any>> -> memref<1x128xf32, #tpu.memory_space<any>>
    %20 = tpu.memref_squeeze %19 : memref<1x128xf32, #tpu.memory_space<any>> -> memref<128xf32, #tpu.memory_space<any>>
    tpu.enqueue_dma source(%18 : memref<128xf32, #tpu.memory_space<any>>) target(%20 : memref<128xf32, #tpu.memory_space<any>>) target_semaphore(%arg4 : memref<!tpu.dma_semaphore, #tpu.memory_space<semaphore_mem>>)
    %21 = arith.addi %1, %4 : i32
    %c2_i32 = arith.constant 2 : i32
    %22 = arith.addi %21, %c2_i32 : i32
    %23 = arith.index_cast %22 : i32 to index
    %24 = memref.load %arg1[%23] : memref<16xi32, #tpu.memory_space<smem>>
    %c0_i32_7 = arith.constant 0 : i32
    %25 = tpu.memref_slice %arg2[%24, %c0_i32_7] : memref<64x128xf32, #tpu.memory_space<any>> -> memref<1x128xf32, #tpu.memory_space<any>>
    %26 = tpu.memref_squeeze %25 : memref<1x128xf32, #tpu.memory_space<any>> -> memref<128xf32, #tpu.memory_space<any>>
    %c0_i32_8 = arith.constant 0 : i32
    %27 = tpu.memref_slice %arg3[%22, %c0_i32_8] : memref<16x128xf32, #tpu.memory_space<any>> -> memref<1x128xf32, #tpu.memory_space<any>>
    %28 = tpu.memref_squeeze %27 : memref<1x128xf32, #tpu.memory_space<any>> -> memref<128xf32, #tpu.memory_space<any>>
    tpu.enqueue_dma source(%26 : memref<128xf32, #tpu.memory_space<any>>) target(%28 : memref<128xf32, #tpu.memory_space<any>>) target_semaphore(%arg4 : memref<!tpu.dma_semaphore, #tpu.memory_space<semaphore_mem>>)
    %29 = arith.addi %1, %4 : i32
    %c3_i32 = arith.constant 3 : i32
    %30 = arith.addi %29, %c3_i32 : i32
    %31 = arith.index_cast %30 : i32 to index
    %32 = memref.load %arg1[%31] : memref<16xi32, #tpu.memory_space<smem>>
    %c0_i32_9 = arith.constant 0 : i32
    %33 = tpu.memref_slice %arg2[%32, %c0_i32_9] : memref<64x128xf32, #tpu.memory_space<any>> -> memref<1x128xf32, #tpu.memory_space<any>>
    %34 = tpu.memref_squeeze %33 : memref<1x128xf32, #tpu.memory_space<any>> -> memref<128xf32, #tpu.memory_space<any>>
    %c0_i32_10 = arith.constant 0 : i32
    %35 = tpu.memref_slice %arg3[%30, %c0_i32_10] : memref<16x128xf32, #tpu.memory_space<any>> -> memref<1x128xf32, #tpu.memory_space<any>>
    %36 = tpu.memref_squeeze %35 : memref<1x128xf32, #tpu.memory_space<any>> -> memref<128xf32, #tpu.memory_space<any>>
    tpu.enqueue_dma source(%34 : memref<128xf32, #tpu.memory_space<any>>) target(%36 : memref<128xf32, #tpu.memory_space<any>>) target_semaphore(%arg4 : memref<!tpu.dma_semaphore, #tpu.memory_space<semaphore_mem>>)
    %37 = arith.addi %1, %4 : i32
    %c4_i32 = arith.constant 4 : i32
    %38 = arith.addi %37, %c4_i32 : i32
    %39 = arith.index_cast %38 : i32 to index
    %40 = memref.load %arg1[%39] : memref<16xi32, #tpu.memory_space<smem>>
    %c0_i32_11 = arith.constant 0 : i32
    %41 = tpu.memref_slice %arg2[%40, %c0_i32_11] : memref<64x128xf32, #tpu.memory_space<any>> -> memref<1x128xf32, #tpu.memory_space<any>>
    %42 = tpu.memref_squeeze %41 : memref<1x128xf32, #tpu.memory_space<any>> -> memref<128xf32, #tpu.memory_space<any>>
    %c0_i32_12 = arith.constant 0 : i32
    %43 = tpu.memref_slice %arg3[%38, %c0_i32_12] : memref<16x128xf32, #tpu.memory_space<any>> -> memref<1x128xf32, #tpu.memory_space<any>>
    %44 = tpu.memref_squeeze %43 : memref<1x128xf32, #tpu.memory_space<any>> -> memref<128xf32, #tpu.memory_space<any>>
    tpu.enqueue_dma source(%42 : memref<128xf32, #tpu.memory_space<any>>) target(%44 : memref<128xf32, #tpu.memory_space<any>>) target_semaphore(%arg4 : memref<!tpu.dma_semaphore, #tpu.memory_space<semaphore_mem>>)
    %45 = arith.addi %1, %4 : i32
    %c5_i32 = arith.constant 5 : i32
    %46 = arith.addi %45, %c5_i32 : i32
    %47 = arith.index_cast %46 : i32 to index
    %48 = memref.load %arg1[%47] : memref<16xi32, #tpu.memory_space<smem>>
    %c0_i32_13 = arith.constant 0 : i32
    %49 = tpu.memref_slice %arg2[%48, %c0_i32_13] : memref<64x128xf32, #tpu.memory_space<any>> -> memref<1x128xf32, #tpu.memory_space<any>>
    %50 = tpu.memref_squeeze %49 : memref<1x128xf32, #tpu.memory_space<any>> -> memref<128xf32, #tpu.memory_space<any>>
    %c0_i32_14 = arith.constant 0 : i32
    %51 = tpu.memref_slice %arg3[%46, %c0_i32_14] : memref<16x128xf32, #tpu.memory_space<any>> -> memref<1x128xf32, #tpu.memory_space<any>>
    %52 = tpu.memref_squeeze %51 : memref<1x128xf32, #tpu.memory_space<any>> -> memref<128xf32, #tpu.memory_space<any>>
    tpu.enqueue_dma source(%50 : memref<128xf32, #tpu.memory_space<any>>) target(%52 : memref<128xf32, #tpu.memory_space<any>>) target_semaphore(%arg4 : memref<!tpu.dma_semaphore, #tpu.memory_space<semaphore_mem>>)
    %53 = arith.addi %1, %4 : i32
    %c6_i32 = arith.constant 6 : i32
    %54 = arith.addi %53, %c6_i32 : i32
    %55 = arith.index_cast %54 : i32 to index
    %56 = memref.load %arg1[%55] : memref<16xi32, #tpu.memory_space<smem>>
    %c0_i32_15 = arith.constant 0 : i32
    %57 = tpu.memref_slice %arg2[%56, %c0_i32_15] : memref<64x128xf32, #tpu.memory_space<any>> -> memref<1x128xf32, #tpu.memory_space<any>>
    %58 = tpu.memref_squeeze %57 : memref<1x128xf32, #tpu.memory_space<any>> -> memref<128xf32, #tpu.memory_space<any>>
    %c0_i32_16 = arith.constant 0 : i32
    %59 = tpu.memref_slice %arg3[%54, %c0_i32_16] : memref<16x128xf32, #tpu.memory_space<any>> -> memref<1x128xf32, #tpu.memory_space<any>>
    %60 = tpu.memref_squeeze %59 : memref<1x128xf32, #tpu.memory_space<any>> -> memref<128xf32, #tpu.memory_space<any>>
    tpu.enqueue_dma source(%58 : memref<128xf32, #tpu.memory_space<any>>) target(%60 : memref<128xf32, #tpu.memory_space<any>>) target_semaphore(%arg4 : memref<!tpu.dma_semaphore, #tpu.memory_space<semaphore_mem>>)
    %61 = arith.addi %1, %4 : i32
    %c7_i32 = arith.constant 7 : i32
    %62 = arith.addi %61, %c7_i32 : i32
    %63 = arith.index_cast %62 : i32 to index
    %64 = memref.load %arg1[%63] : memref<16xi32, #tpu.memory_space<smem>>
    %c0_i32_17 = arith.constant 0 : i32
    %65 = tpu.memref_slice %arg2[%64, %c0_i32_17] : memref<64x128xf32, #tpu.memory_space<any>> -> memref<1x128xf32, #tpu.memory_space<any>>
    %66 = tpu.memref_squeeze %65 : memref<1x128xf32, #tpu.memory_space<any>> -> memref<128xf32, #tpu.memory_space<any>>
    %c0_i32_18 = arith.constant 0 : i32
    %67 = tpu.memref_slice %arg3[%62, %c0_i32_18] : memref<16x128xf32, #tpu.memory_space<any>> -> memref<1x128xf32, #tpu.memory_space<any>>
    %68 = tpu.memref_squeeze %67 : memref<1x128xf32, #tpu.memory_space<any>> -> memref<128xf32, #tpu.memory_space<any>>
    tpu.enqueue_dma source(%66 : memref<128xf32, #tpu.memory_space<any>>) target(%68 : memref<128xf32, #tpu.memory_space<any>>) target_semaphore(%arg4 : memref<!tpu.dma_semaphore, #tpu.memory_space<semaphore_mem>>)
    %c1_i32_19 = arith.constant 1 : i32
    %c0_i32_20 = arith.constant 0 : i32
    %c0_i32_21 = arith.constant 0 : i32
    %69 = tpu.memref_slice %arg2[%c0_i32_20, %c0_i32_21] : memref<64x128xf32, #tpu.memory_space<any>> -> memref<8x128xf32, #tpu.memory_space<any>>
    %c0_i32_22 = arith.constant 0 : i32
    %70 = tpu.memref_slice %arg3[%1, %c0_i32_22] : memref<16x128xf32, #tpu.memory_space<any>> -> memref<8x128xf32, #tpu.memory_space<any>>
    tpu.wait_dma2 semaphore(%arg4 : memref<!tpu.dma_semaphore, #tpu.memory_space<semaphore_mem>>) src(%69 : memref<8x128xf32, #tpu.memory_space<any>>) dst(%70 : memref<8x128xf32, #tpu.memory_space<any>>)
    return
  }
}

</mosaic_0001>

<bundles_post_ra>
// kernel: tpu_custom_call.1
= control target key start
LH: loop header
LB: loop body
LE: loop exit
PB: predicated region body
PF: predicated region fallthrough
CT: control target
= control target key end

     0   :  { %s249_s9 = smov [#allocation4]   ;;  %s352_s0 = inlined_call_operand.hbm [shape: s32[16], index: 0, kind: input, shape index: {}]   ;;  %s353_s1 = inlined_call_operand.hbm [shape: f32[64,128], index: 1, kind: input, shape index: {}]   ;;  %s354_s2 = inlined_call_operand.hbm [shape: f32[16,128], index: 2, kind: output, shape index: {}]  }
   0x1   :  { %8 = dma.hbm_to_smem %s352_s0, 16, %s249_s9, [#allocation3] }
   0x2   :  { %241 = dma.done.wait [#allocation3], 16 }
   0x3   :  { %242 = vsyncadd [#allocation3], 4294967280 }
   0x4   :  { %10 = sfence }
   0x5   :  { %s271_s12 = smov 0  }
   0x6 LB: > { %s277_s13 = sshll.u32 %s247_s12, 3  ;;  %s209_s15 = sshll.u32 %s247_s12, 7  ;;  %s247_s12 = sphi %s271_s12, %s16_s12  }
   0x7   : > { %s20_s14 = sld [smem:[#allocation4 + %s277_s13]]  ;;  %s284_s17 = scalar_lea.hbm %s354_s2, %s209_s15 }
   0x8   : > { %s32_s19 = sadd.s32 1, %s277_s13  ;;  %s250_s23 = smov [#allocation2]  }
   0x9   : > { %s251_s24 = smov 131072   ;;  %s252_s25 = smov 0  }
   0xa   : > { %s142_s27 = scalar_lea.hbm %s284_s17, 16  ;;  %s45_s29 = sadd.s32 2, %s277_s13 }
   0xb   : > { %s148_s6 = scalar_lea.hbm %s284_s17, 32  ;;  %s58_s8 = sadd.s32 3, %s277_s13 }
   0xc   : > { %s154_s15 = scalar_lea.hbm %s284_s17, 48  ;;  %s71_s16 = sadd.s32 4, %s277_s13 }
   0xd   : > { %s185_s18 = sshll.u32 %s20_s14, 4 }
   0xe   : > { %s22_s22 = scalar_lea.hbm %s353_s1, %s185_s18 }
   0xf   : > { %31 = dma.general %s22_s22, 16, %s284_s17, %s250_s23, %s251_s24, [#allocation6], %s252_s25, 0  }
  0x10   : > { %s33_s26 = sld [smem:[#allocation4 + %s32_s19]]  ;;  %s160_s22 = scalar_lea.hbm %s284_s17, 64 }
  0x16   : > { %s187_s28 = sshll.u32 %s33_s26, 4 }
  0x17   : > { %s35_s4 = scalar_lea.hbm %s353_s1, %s187_s28 }
  0x18   : > { %44 = dma.general %s35_s4, 16, %s142_s27, %s250_s23, %s251_s24, [#allocation8], %s252_s25, 0  }
  0x19   : > { %s46_s5 = sld [smem:[#allocation4 + %s45_s29]]  ;;  %s84_s27 = sadd.s32 5, %s277_s13 }
  0x1a   : > { %s166_s4 = scalar_lea.hbm %s284_s17, 80 }
  0x1f   : > { %s190_s7 = sshll.u32 %s46_s5, 4 }
  0x20   : > { %s48_s11 = scalar_lea.hbm %s353_s1, %s190_s7 }
  0x21   : > { %57 = dma.general %s48_s11, 16, %s148_s6, %s250_s23, %s251_s24, [#allocation10], %s252_s25, 0  }
  0x22   : > { %s59_s14 = sld [smem:[#allocation4 + %s58_s8]]  ;;  %s97_s6 = sadd.s32 6, %s277_s13 }
  0x23   : > { %s172_s11 = scalar_lea.hbm %s284_s17, 96 }
  0x28   : > { %s193_s0 = sshll.u32 %s59_s14, 4 }
  0x29   : > { %s61_s20 = scalar_lea.hbm %s353_s1, %s193_s0 }
  0x2a   : > { %70 = dma.general %s61_s20, 16, %s154_s15, %s250_s23, %s251_s24, [#allocation12], %s252_s25, 0  }
  0x2b   : > { %s72_s21 = sld [smem:[#allocation4 + %s71_s16]]  ;;  %s110_s15 = sadd.s32 7, %s277_s13 }
  0x2c   : > { %s178_s20 = scalar_lea.hbm %s284_s17, 112 }
  0x31   : > { %s196_s26 = sshll.u32 %s72_s21, 4 }
  0x32   : > { %s74_s30 = scalar_lea.hbm %s353_s1, %s196_s26 }
  0x33   : > { %83 = dma.general %s74_s30, 16, %s160_s22, %s250_s23, %s251_s24, [#allocation14], %s252_s25, 0  }
  0x34   : > { %s85_s3 = sld [smem:[#allocation4 + %s84_s27]] }
  0x3a   : > { %s199_s5 = sshll.u32 %s85_s3, 4 }
  0x3b   : > { %s87_s9 = scalar_lea.hbm %s353_s1, %s199_s5 }
  0x3c   : > { %96 = dma.general %s87_s9, 16, %s166_s4, %s250_s23, %s251_s24, [#allocation16], %s252_s25, 0  }
  0x3d   : > { %s98_s10 = sld [smem:[#allocation4 + %s97_s6]] }
  0x43   : > { %s202_s14 = sshll.u32 %s98_s10, 4 }
  0x44   : > { %s100_s18 = scalar_lea.hbm %s353_s1, %s202_s14 }
  0x45   : > { %109 = dma.general %s100_s18, 16, %s172_s11, %s250_s23, %s251_s24, [#allocation18], %s252_s25, 0  }
  0x46   : > { %s111_s19 = sld [smem:[#allocation4 + %s110_s15]] }
  0x4c   : > { %s205_s21 = sshll.u32 %s111_s19, 4 }
  0x4d   : > { %s113_s27 = scalar_lea.hbm %s353_s1, %s205_s21 }
  0x4e   : > { %122 = dma.general %s113_s27, 16, %s178_s20, %s250_s23, %s251_s24, [#allocation20], %s252_s25, 0  }
  0x4f   : > { %243 = dma.done.wait [#allocation2], 128 }
  0x50   : > { %244 = vsyncadd [#allocation2], 4294967168  ;;  %s16_s12 = sadd.s32 1, %s247_s12  }
  0x51   : > { %p13_p0 = scmp.ge.s32.totalorder %s16_s12, 2  }
  0x53   :  { %15 = sbr.rel (!%p13_p0) target bundleno = 6 (0x6), region = 35 }
  0x58   :  { %126 = vsyncmov [#allocation2] }
  0x5b   :  { %s127_s13 = vpop.sfrf %126 }
  0x5c   :  { %p208_p1 = scmp.ne.s32.totalorder %s127_s13, 0 }
  0x5e   :  { %131 = shalt.err (%p208_p1)  }

</bundles_post_ra>
